<compile_context>
chip_gen: v7x
topology: tpu7x:2x2x1
jax: 0.10.0
libtpu: 0.0.40
codegen_flags: <defaults>
</compile_context>

<pallas_src>
import functools

import jax
import jax.numpy as jnp
from jax.experimental import pallas as pl
from jax.experimental.pallas import tpu as pltpu


def _round_up(x, m):
    return (x + m - 1) // m * m


def _pick_tile(total, target, granule=128):
    """Largest multiple of `granule` that divides `total` and is <= target."""
    target = max(granule, min(target, total))
    d = (target // granule) * granule
    while total % d != 0:
        d -= granule
    return d


def _vmem_limit_bytes():
    """~75% of physical VMEM: ~96 MiB on v5e/v6e (128 MiB), ~48 MiB on v7x (64 MiB)."""
    cap = 128 * 1024 * 1024
    try:
        info = pltpu.get_tpu_info()
        cap = int(getattr(info, "vmem_capacity_bytes", cap))
    except Exception:
        pass
    return int(min((cap * 3) // 4, 100 * 1024 * 1024))


# --------------------------- kernels ---------------------------------------

def _linear_kernel(x_ref, w_ref, y_ref):
    # y = x @ w ; w is already stored as [in, out] so the MXU consumes it directly.
    y_ref[...] = jnp.dot(
        x_ref[...], w_ref[...], preferred_element_type=jnp.float32
    ).astype(y_ref.dtype)


def _aggregate_kernel(a_ref, y_ref, *rest, epilogue, num_valid):
    # acc[i] = sum_k A[i, k] @ Y[k]   (reduction over neighbor blocks k)
    # epilogue == "relu_w2":      o[i] = relu(acc[i]) @ W2
    # epilogue == "log_softmax":  o[i] = log_softmax(acc[i][:, :num_valid])
    if epilogue == "relu_w2":
        w_ref, o_ref, acc_ref = rest
    else:
        o_ref, acc_ref = rest

    k = pl.program_id(1)

    @pl.when(k == 0)
    def _():
        acc_ref[...] = jnp.zeros_like(acc_ref)

    # int8 A tile -> bf16 right before the dot (exact for 0/1; VPU work hidden
    # under the memory-bound DMA pipeline).
    a = a_ref[...].astype(jnp.bfloat16)
    acc_ref[...] += jnp.dot(a, y_ref[...], preferred_element_type=jnp.float32)

    @pl.when(k == pl.num_programs(1) - 1)
    def _():
        z = acc_ref[...]
        if epilogue == "relu_w2":
            # Padded lanes of acc are exactly zero -> relu keeps them zero, and
            # the padded rows of W2 are zero, so no mask is needed.
            h = jnp.maximum(z, 0.0).astype(jnp.bfloat16)
            o_ref[...] = jnp.dot(
                h, w_ref[...], preferred_element_type=jnp.float32
            ).astype(o_ref.dtype)
        else:  # "log_softmax" over the first `num_valid` (unpadded) lanes
            col = jax.lax.broadcasted_iota(jnp.int32, z.shape, 1)
            z = jnp.where(col < num_valid, z, -1e30)
            z_max = jnp.max(z, axis=1, keepdims=True)
            z_shift = z - z_max
            lse = jnp.log(jnp.sum(jnp.exp(z_shift), axis=1, keepdims=True))
            o_ref[...] = (z_shift - lse).astype(o_ref.dtype)


# --------------------------- pallas_call wrappers ---------------------------

def _linear(x, w, block_m, vmem_limit):
    n_pad, f_in = x.shape
    f_out = w.shape[1]
    return pl.pallas_call(
        _linear_kernel,
        out_shape=jax.ShapeDtypeStruct((n_pad, f_out), jnp.bfloat16),
        grid_spec=pltpu.PrefetchScalarGridSpec(
            num_scalar_prefetch=0,
            grid=(n_pad // block_m,),
            in_specs=[
                pl.BlockSpec((block_m, f_in), lambda i: (i, 0),
                             memory_space=pltpu.MemorySpace.VMEM),
                pl.BlockSpec((f_in, f_out), lambda i: (0, 0),
                             memory_space=pltpu.MemorySpace.VMEM),
            ],
            out_specs=pl.BlockSpec((block_m, f_out), lambda i: (i, 0),
                                   memory_space=pltpu.MemorySpace.VMEM),
        ),
        compiler_params=pltpu.CompilerParams(
            dimension_semantics=("parallel",),
            vmem_limit_bytes=vmem_limit,
        ),
        cost_estimate=pl.CostEstimate(
            flops=int(2 * n_pad * f_in * f_out),
            transcendentals=0,
            bytes_accessed=int(2 * (n_pad * f_in + f_in * f_out + n_pad * f_out)),
        ),
    )(x, w)


def _aggregate(adj_i8, y, w2t, block_m, block_k, *,
               epilogue, num_valid, out_dtype, vmem_limit):
    n_pad = adj_i8.shape[0]
    f = y.shape[1]
    f_out = w2t.shape[1] if w2t is not None else f
    out_bytes = jnp.dtype(out_dtype).itemsize

    # Prefer a fully VMEM-resident Y (collapse the neighbor-reduction axis) when
    # the working set fits comfortably in the VMEM budget; otherwise tile k.
    resident_bytes = (2 * block_m * n_pad          # A int8 tile, double-buffered
                      + 2 * n_pad * f * 2          # Y resident (double-buffered)
                      + block_m * f * 4            # f32 accumulator
                      + 2 * block_m * f_out * out_bytes
                      + (2 * f * f_out * 2 if w2t is not None else 0))
    if resident_bytes <= int(0.6 * vmem_limit):
        bk = n_pad
    else:
        bk = _pick_tile(n_pad, block_k, 128)

    in_specs = [
        pl.BlockSpec((block_m, bk), lambda i, k: (i, k),
                     memory_space=pltpu.MemorySpace.VMEM),
        pl.BlockSpec((bk, f), lambda i, k: (k, 0),
                     memory_space=pltpu.MemorySpace.VMEM),
    ]
    operands = (adj_i8, y)
    flops = 2 * n_pad * n_pad * f
    if w2t is not None:
        in_specs.append(pl.BlockSpec((f, f_out), lambda i, k: (0, 0),
                                     memory_space=pltpu.MemorySpace.VMEM))
        operands = (adj_i8, y, w2t)
        flops += 2 * n_pad * f * f_out

    kernel = functools.partial(_aggregate_kernel,
                               epilogue=epilogue, num_valid=num_valid)
    return pl.pallas_call(
        kernel,
        out_shape=jax.ShapeDtypeStruct((n_pad, f_out), out_dtype),
        grid_spec=pltpu.PrefetchScalarGridSpec(
            num_scalar_prefetch=0,
            grid=(n_pad // block_m, n_pad // bk),
            in_specs=in_specs,
            out_specs=pl.BlockSpec((block_m, f_out), lambda i, k: (i, 0),
                                   memory_space=pltpu.MemorySpace.VMEM),
            scratch_shapes=[pltpu.VMEM((block_m, f), jnp.float32)],
        ),
        compiler_params=pltpu.CompilerParams(
            dimension_semantics=("parallel", "arbitrary"),
            vmem_limit_bytes=vmem_limit,
        ),
        cost_estimate=pl.CostEstimate(
            flops=int(flops),
            transcendentals=int(n_pad * f_out if epilogue == "log_softmax" else 0),
            bytes_accessed=int(n_pad * n_pad                       # A, int8
                               + n_pad * f * 2 * max(1, n_pad // (block_m if bk < n_pad else n_pad))
                               + n_pad * f_out * out_bytes),
        ),
    )(*operands)


# --------------------------- forward ----------------------------------------

def prepare_adjacency(adjacency):
    """Pad + int8-cast the (binary) dense adjacency once per graph.

    Exact only for a 0/1 adjacency (as produced by to_dense_adj); keep f32 in
    the wrapper if a weighted / degree-normalized adjacency is ever used.
    """
    n = adjacency.shape[0]
    n_pad = _round_up(n, 128)
    return jnp.pad(adjacency.astype(jnp.int8), ((0, n_pad - n), (0, n_pad - n)))


def vanilla_gnn_forward(x, adjacency, w1, w2, *, adjacency_int8=None,
                        block_rows=512, block_neighbors=512):
    """Forward pass of VanillaGNN.

    x              [N, dim_in]       node features
    adjacency      [N, N]            dense (binary) adjacency
    w1             [dim_h, dim_in]   torch.nn.Linear weight (no bias)
    w2             [dim_out, dim_h]  torch.nn.Linear weight (no bias)
    adjacency_int8 optional pre-padded int8 adjacency from prepare_adjacency()
                   (hoist this per graph to avoid re-doing the pad/cast).
    returns        [N, dim_out]      log-probabilities
    """
    n, dim_in = x.shape
    dim_h = w1.shape[0]
    dim_out = w2.shape[0]

    # Lane-dense padding of the feature dims.
    f_in = _round_up(dim_in, 128)
    f_h = _round_up(dim_h, 128)
    f_out = _round_up(dim_out, 128)

    # Node dim: pad only to 128 (no lcm blow-up); tiles are divisors of n_pad.
    n_pad = _round_up(n, 128)
    bm_target = min(block_rows, n_pad)
    if n_pad >= 256:
        # keep at least 2 row blocks so the "parallel" axis can feed both v7x TCs
        bm_target = min(bm_target, n_pad // 2)
    bm = _pick_tile(n_pad, bm_target, 128)

    vmem_limit = _vmem_limit_bytes()

    bf16 = jnp.bfloat16
    if adjacency_int8 is None:
        adjacency_int8 = prepare_adjacency(adjacency)
    assert adjacency_int8.shape == (n_pad, n_pad) and adjacency_int8.dtype == jnp.int8

    xb = jnp.pad(x, ((0, n_pad - n), (0, f_in - dim_in))).astype(bf16)
    # Pre-transpose the torch.nn.Linear weights once so kernels contract them as stored.
    w1t = jnp.pad(w1.T, ((0, f_in - dim_in), (0, f_h - dim_h))).astype(bf16)
    w2t = jnp.pad(w2.T, ((0, f_h - dim_h), (0, f_out - dim_out))).astype(bf16)

    y1 = _linear(xb, w1t, bm, vmem_limit)                       # X @ W1^T
    h2 = _aggregate(adjacency_int8, y1, w2t, bm, block_neighbors,
                    epilogue="relu_w2", num_valid=dim_h,
                    out_dtype=bf16, vmem_limit=vmem_limit)      # relu(A @ .) @ W2^T
    z = _aggregate(adjacency_int8, h2, None, bm, block_neighbors,
                   epilogue="log_softmax", num_valid=dim_out,
                   out_dtype=jnp.float32, vmem_limit=vmem_limit)  # log_softmax(A @ .)
    return z[:n, :dim_out]


# --------------------------- reference --------------------------------------

def vanilla_gnn_ref(x, adjacency, w1, w2, *, matmul_dtype=jnp.float32):
    """Pure-JAX reference.  matmul_dtype=bfloat16 matches the kernel's MXU precision."""
    md = matmul_dtype
    a = adjacency.astype(md)
    y1 = jnp.dot(x.astype(md), w1.T.astype(md), preferred_element_type=jnp.float32)
    h = jnp.maximum(jnp.dot(a, y1.astype(md), preferred_element_type=jnp.float32), 0.0)
    y2 = jnp.dot(h.astype(md), w2.T.astype(md), preferred_element_type=jnp.float32)
    z = jnp.dot(a, y2.astype(md), preferred_element_type=jnp.float32)
    return jax.nn.log_softmax(z, axis=1)


if __name__ == "__main__":
    # Small synthetic shapes consistent with the module's forward:
    #   x: [num_nodes, dim_in], adjacency: [num_nodes, num_nodes]
    num_nodes, dim_in, dim_h, dim_out = 64, 32, 16, 8

    key = jax.random.PRNGKey(0)
    k_x, k_adj, k_w1, k_w2 = jax.random.split(key, 4)

    x = jax.random.normal(k_x, (num_nodes, dim_in), dtype=jnp.float32)

    # Dense binary adjacency (as produced by to_dense_adj) with self-loops.
    adjacency = (jax.random.uniform(k_adj, (num_nodes, num_nodes)) < 0.1).astype(jnp.float32)
    adjacency = jnp.maximum(adjacency, jnp.eye(num_nodes, dtype=jnp.float32))

    # torch.nn.Linear weights: shape [out_features, in_features], no bias.
    w1 = jax.random.normal(k_w1, (dim_h, dim_in), dtype=jnp.float32) / jnp.sqrt(dim_in)
    w2 = jax.random.normal(k_w2, (dim_out, dim_h), dtype=jnp.float32) / jnp.sqrt(dim_h)

    # Hoisted once per graph (would be cached at graph-load time in practice).
    adj_i8 = prepare_adjacency(adjacency)

    out = vanilla_gnn_forward(x, adjacency, w1, w2, adjacency_int8=adj_i8)
    out = jax.block_until_ready(out)

    assert out.shape == (num_nodes, dim_out)
    assert bool(jnp.all(jnp.isfinite(out)))

    # Tight check vs a precision-matched reference (same bf16 operands, f32 accumulate).
    ref_matched = vanilla_gnn_ref(x, adjacency, w1, w2, matmul_dtype=jnp.bfloat16)
    assert jnp.allclose(out, ref_matched, atol=3e-3, rtol=3e-3), \
        "kernel mismatch vs precision-matched reference"

    # Loose sanity check vs the exact f32 reference (difference is bf16 matmul noise only).
    ref_f32 = vanilla_gnn_ref(x, adjacency, w1, w2, matmul_dtype=jnp.float32)
    assert jnp.allclose(out, ref_f32, atol=0.5, rtol=0.1), \
        "kernel diverges from exact f32 reference"

    print("KERNEL_OK")
</pallas_src>

<mosaic_0001>
module attributes {stable_mosaic.version = 11 : i64} {
  func.func @_linear_kernel(%arg0: i32, %arg1: memref<128x128xbf16, #tpu.memory_space<vmem>>, %arg2: memref<128x128xbf16, #tpu.memory_space<vmem>>, %arg3: memref<128x128xbf16, #tpu.memory_space<vmem>>) attributes {dimension_semantics = [#tpu.dimension_semantics<parallel>], iteration_bounds = array<i64: 1>, scalar_prefetch = 0 : i64, scratch_operands = 0 : i64, tpu.core_type = #tpu.core_type<tc>, window_params = [{transform_indices = @transform_0, window_bounds = array<i64: 128, 128>}, {pipeline_mode = #tpu.pipeline_mode<synchronous>, transform_indices = @transform_1, window_bounds = array<i64: 128, 128>}, {transform_indices = @transform_2, window_bounds = array<i64: 128, 128>}]} {
    %c0 = arith.constant 0 : index
    %c0_0 = arith.constant 0 : index
    %0 = vector.load %arg1[%c0, %c0_0] : memref<128x128xbf16, #tpu.memory_space<vmem>>, vector<128x128xbf16>
    %c0_1 = arith.constant 0 : index
    %c0_2 = arith.constant 0 : index
    %1 = vector.load %arg2[%c0_1, %c0_2] : memref<128x128xbf16, #tpu.memory_space<vmem>>, vector<128x128xbf16>
    %cst = arith.constant dense<0.000000e+00> : vector<128x128xf32>
    %2 = tpu.matmul %0, %1, %cst {dimension_numbers = #tpu.dot_dimension_numbers<[1], [0], [0], [1], [0, 0, 1, 1], [], []>} : vector<128x128xbf16>, vector<128x128xbf16>, vector<128x128xf32> -> vector<128x128xf32>
    %3 = arith.truncf %2 : vector<128x128xf32> to vector<128x128xbf16>
    %c0_3 = arith.constant 0 : index
    %c0_4 = arith.constant 0 : index
    %4 = vector.load %arg3[%c0_3, %c0_4] : memref<128x128xbf16, #tpu.memory_space<vmem>>, vector<128x128xbf16>
    tpu.vector_store %arg3[%c0_3, %c0_4], %3 {strides = array<i32>} : memref<128x128xbf16, #tpu.memory_space<vmem>>, vector<128x128xbf16>,
    return
  }
  func.func @transform_0(%arg0: i32) -> (i32, i32) {
    %c0_i32 = arith.constant 0 : i32
    %c0_i32_0 = arith.constant 0 : i32
    return %arg0, %c0_i32 : i32, i32
  }
  func.func @transform_1(%arg0: i32) -> (i32, i32) {
    %c0_i32 = arith.constant 0 : i32
    %c0_i32_0 = arith.constant 0 : i32
    %c0_i32_1 = arith.constant 0 : i32
    return %c0_i32, %c0_i32_0 : i32, i32
  }
  func.func @transform_2(%arg0: i32) -> (i32, i32) {
    %c0_i32 = arith.constant 0 : i32
    %c0_i32_0 = arith.constant 0 : i32
    return %arg0, %c0_i32 : i32, i32
  }
}

</mosaic_0001>

<bundles_post_ra>
// kernel: tpu_custom_call.1
= control target key start
LH: loop header
LB: loop body
LE: loop exit
PB: predicated region body
PF: predicated region fallthrough
CT: control target
= control target key end

     0   :  { %7 = vsyncpa [#allocation3], 0  ;;  %s681_s0 = inlined_call_operand.hbm [shape: bf16[128,128], index: 0, kind: input, shape index: {}]   ;;  %s682_s1 = inlined_call_operand.hbm [shape: bf16[128,128], index: 1, kind: input, shape index: {}]   ;;  %s683_s2 = inlined_call_operand.hbm [shape: bf16[128,128], index: 2, kind: output, shape index: {}]  }
   0x1   :  { %8 = vsyncpa [#allocation6], 0 }
   0x2   :  { %9 = vsyncpa [#allocation4], 0  ;;  %s616_s9 = smov [#allocation2]   ;;  %s544_s13 = scalar_lea.hbm %s681_s0, 1024 }
   0x3   :  { %s15_s10 = sshll.u32 %s616_s9, 4  ;;  %p545_p0 = scmp.ne.s32.totalorder %s681_s0, %s544_s13  ;;  %s16_s10 = int_to_ptr.vmem [resolvable:$true] %s15_s10 }
   0x4   :  { %p548_p1 = scmp.lt.u32.totalorder %s544_s13, %s681_s0 }
   0x6   :  { %p550_p2 = pnand %p548_p1, %p545_p0 }
   0x8   :  { %553 = shalt.err (!%p550_p2)
}
   0x9   :  { %s554_s18 = scalar_lea.vmem %s16_s10, 1024  ;;  %p559_p4 = scmp.lt.s32.totalorder %s16_s10, %s16_s10 }
   0xa   :  { %p555_p3 = scmp.ne.s32.totalorder %s16_s10, %s554_s18  ;;  %p560_p5 = scmp.lt.s32.totalorder %s554_s18, %s554_s18 }
   0xc   :  { %p561_p6 = por %p560_p5, %p559_p4 }
   0xe   :  { %p562_p7 = pnand %p561_p6, %p555_p3 }
  0x10   :  { %565 = shalt.err (!%p562_p7)
}
  0x11   :  { %s617_s19 = smov 64   ;;  %s618_s20 = smov 4  }
  0x12   :  { %21 = dma.hbm_to_vmem [thread:$0]  %s681_s0, 1024, %s16_s10, [#allocation3], %s617_s19, %s617_s19, %s618_s20  }
  0x13   :  { %s619_s23 = smov [#allocation5]   ;;  %s566_s27 = scalar_lea.hbm %s682_s1, 1024 }
  0x14   :  { %s27_s24 = sshll.u32 %s619_s23, 4  ;;  %p567_p8 = scmp.ne.s32.totalorder %s682_s1, %s566_s27  ;;  %s28_s24 = int_to_ptr.vmem [resolvable:$true] %s27_s24 }
  0x15   :  { %p570_p9 = scmp.lt.u32.totalorder %s566_s27, %s682_s1 }
  0x17   :  { %p572_p10 = pnand %p570_p9, %p567_p8 }
  0x19   :  { %575 = shalt.err (!%p572_p10)
}
  0x1a   :  { %s576_s4 = scalar_lea.vmem %s28_s24, 1024  ;;  %p581_p12 = scmp.lt.s32.totalorder %s28_s24, %s28_s24 }
  0x1b   :  { %p577_p11 = scmp.ne.s32.totalorder %s28_s24, %s576_s4  ;;  %p582_p13 = scmp.lt.s32.totalorder %s576_s4, %s576_s4 }
  0x1d   :  { %p583_p0 = por %p582_p13, %p581_p12 }
  0x1f   :  { %p584_p1 = pnand %p583_p0, %p577_p11 }
  0x21   :  { %587 = shalt.err (!%p584_p1)
}
  0x22   :  { %33 = dma.hbm_to_vmem [thread:$0]  %s682_s1, 1024, %s28_s24, [#allocation6], %s617_s19, %s617_s19, %s618_s20  }
  0x23   :  { %610 = dma.done.wait [#allocation3], 1024  }
  0x24   :  { %611 = vsyncadd [#allocation3], 4294966272 }
  0x25   :  { %612 = dma.done.wait [#allocation6], 1024  }
  0x26   :  { %613 = vsyncadd [#allocation6], 4294966272  ;;  %v528_v0 = vld [vmem:[#allocation5] sm:$0xff]   ;;  %v529_v1 = vld [vmem:[#allocation5 + $0x8] sm:$0xff]   ;;  %s620_s1 = smov [#allocation7]  }
  0x27   :  { %475 = vmatprep.subr.bf16.mxu0 %v528_v0  ;;  %507 = vmatprep.subr.bf16.mxu1 %v528_v0  ;;  %v530_v2 = vld [vmem:[#allocation5 + $0x10] sm:$0xff]   ;;  %v531_v3 = vld [vmem:[#allocation5 + $0x18] sm:$0xff]   ;;  %v536_v4 = vld [vmem:[#allocation2] sm:$0xff]   ;;  %s351_s6 = sshll.u32 %s620_s1, 4  ;;  %s352_s6 = int_to_ptr.vmem [resolvable:$true] %s351_s6 }
  0x28   :  { %476 = vmatpush3.bf16.msra.mxu0 %v528_v0  ;;  %515 = vmatpush3.bf16.msra.mxu1 %v528_v0  ;;  %v537_v5 = vld [vmem:[#allocation2 + $0x20] sm:$0xff]   ;;  %v533_v7 = vld [vmem:[#allocation5 + $0x28] sm:$0xff]   ;;  %v534_v8 = vld [vmem:[#allocation5 + $0x30] sm:$0xff]   ;;  %s588_s7 = scalar_lea.vmem %s352_s6, 1024  ;;  %p593_p3 = scmp.lt.s32.totalorder %s352_s6, %s352_s6 }
  0x29   :  { %477 = vmatprep.subr.bf16.mxu0 %v529_v1  ;;  %508 = vmatprep.subr.bf16.mxu1 %v529_v1  ;;  %v532_v6 = vld [vmem:[#allocation5 + $0x20] sm:$0xff]   ;;  %v535_v9 = vld [vmem:[#allocation5 + $0x38] sm:$0xff]   ;;  %v538_v10 = vld [vmem:[#allocation2 + $0x8] sm:$0xff]   ;;  %p589_p2 = scmp.ne.s32.totalorder %s352_s6, %s588_s7  ;;  %p594_p4 = scmp.lt.s32.totalorder %s588_s7, %s588_s7 }
  0x2a   :  { %491 = vmatprep.mubr.bf16.mxu0 %v536_v4  ;;  %499 = vmatprep.mubr.bf16.mxu1 %v537_v5  ;;  %v539_v11 = vld [vmem:[#allocation2 + $0x28] sm:$0xff]   ;;  %v540_v12 = vld [vmem:[#allocation2 + $0x10] sm:$0xff]   ;;  %v542_v14 = vld [vmem:[#allocation2 + $0x18] sm:$0xff]  }
  0x2b   :  { %v541_v13 = vld [vmem:[#allocation2 + $0x30] sm:$0xff]   ;;  %v543_v15 = vld [vmem:[#allocation2 + $0x38] sm:$0xff]   ;;  %p595_p5 = por %p594_p4, %p593_p3 }
  0x2c   :  { %478 = vmatpush3.bf16.msra.mxu0 %v529_v1  ;;  %516 = vmatpush3.bf16.msra.mxu1 %v529_v1 }
  0x2d   :  { %479 = vmatprep.subr.bf16.mxu0 %v530_v2  ;;  %509 = vmatprep.subr.bf16.mxu1 %v530_v2  ;;  %p596_p6 = pnand %p595_p5, %p589_p2 }
  0x30   :  { %480 = vmatpush3.bf16.msra.mxu0 %v530_v2  ;;  %517 = vmatpush3.bf16.msra.mxu1 %v530_v2 }
  0x31   :  { %481 = vmatprep.subr.bf16.mxu0 %v531_v3  ;;  %510 = vmatprep.subr.bf16.mxu1 %v531_v3 }
  0x34   :  { %482 = vmatpush3.bf16.msra.mxu0 %v531_v3  ;;  %518 = vmatpush3.bf16.msra.mxu1 %v531_v3 }
  0x35   :  { %483 = vmatprep.subr.bf16.mxu0 %v532_v6  ;;  %511 = vmatprep.subr.bf16.mxu1 %v532_v6 }
  0x38   :  { %484 = vmatpush3.bf16.msra.mxu0 %v532_v6  ;;  %519 = vmatpush3.bf16.msra.mxu1 %v532_v6 }
  0x39   :  { %485 = vmatprep.subr.bf16.mxu0 %v533_v7  ;;  %512 = vmatprep.subr.bf16.mxu1 %v533_v7 }
  0x3c   :  { %486 = vmatpush3.bf16.msra.mxu0 %v533_v7  ;;  %520 = vmatpush3.bf16.msra.mxu1 %v533_v7 }
  0x3d   :  { %487 = vmatprep.subr.bf16.mxu0 %v534_v8  ;;  %513 = vmatprep.subr.bf16.mxu1 %v534_v8 }
  0x40   :  { %488 = vmatpush3.bf16.msra.mxu0 %v534_v8  ;;  %521 = vmatpush3.bf16.msra.mxu1 %v534_v8 }
  0x41   :  { %489 = vmatprep.subr.bf16.mxu0 %v535_v9  ;;  %514 = vmatprep.subr.bf16.mxu1 %v535_v9 }
  0x44   :  { %490 = vmatpush3.bf16.msra.mxu0 %v535_v9  ;;  %522 = vmatpush3.bf16.msra.mxu1 %v535_v9 }
  0x47   :  { %492 = vmatmul.mubr.bf16.vlgmr.msra.gmra.mrb[0].mxu0 %v538_v10  ;;  %500 = vmatmul.mubr.bf16.vlgmr.msra.gmra.mrb[0].mxu1 %v539_v11 }
  0x48   :  { %495 = vmatprep.mubr.bf16.mxu0 %v540_v12  ;;  %503 = vmatprep.mubr.bf16.mxu1 %v541_v13 }
  0x4f   :  { %496 = vmatmul.mubr.bf16.gmra.mrb[4].mxu0 %v542_v14  ;;  %504 = vmatmul.mubr.bf16.gmra.mrb[4].mxu1 %v543_v15 }
 0x11a   :  { %v493_v16 = vpop.f32.mrb[0].mxu0  ;;  %v501_v17 = vpop.f32.mrb[0].mxu1 }
 0x11b   :  { %v203_v18 = vpop.f32.mrb[1].mxu0  ;;  %v235_v19 = vpop.f32.mrb[1].mxu1 }
 0x11c   :  { %v494_v20 = vpop.f32.mrb[2].mxu0  ;;  %v502_v21 = vpop.f32.mrb[2].mxu1 }
 0x11d   :  { %v420_v22 = vpack.c.bf16 %v494_v20, %v493_v16  ;;  %v440_v23 = vpack.c.bf16 %v502_v21, %v501_v17  ;;  %v206_v24 = vpop.f32.mrb[3].mxu0  ;;  %v238_v25 = vpop.f32.mrb[3].mxu1 }
 0x11e   :  { %v415_v26 = vpack.c.bf16 %v206_v24, %v203_v18  ;;  %v435_v27 = vpack.c.bf16 %v238_v25, %v235_v19 }
 0x11f   :  { %452 = vst [vmem:[#allocation7 + $0x8] sm:$0xff] %v420_v22   ;;  %456 = vst [vmem:[#allocation7 + $0x28] sm:$0xff] %v440_v23  }
 0x120   :  { %416 = vst [vmem:[#allocation7] sm:$0xff] %v415_v26   ;;  %455 = vst [vmem:[#allocation7 + $0x20] sm:$0xff] %v435_v27  }
 0x122   :  { %v497_v28 = vpop.f32.mrb[4].mxu0  ;;  %v505_v29 = vpop.f32.mrb[4].mxu1 }
 0x123   :  { %v219_v30 = vpop.f32.mrb[5].mxu0  ;;  %v251_v31 = vpop.f32.mrb[5].mxu1 }
 0x124   :  { %v498_v32 = vpop.f32.mrb[6].mxu0  ;;  %v506_v33 = vpop.f32.mrb[6].mxu1 }
 0x125   :  { %v430_v34 = vpack.c.bf16 %v498_v32, %v497_v28  ;;  %v450_v35 = vpack.c.bf16 %v506_v33, %v505_v29  ;;  %v222_v36 = vpop.f32.mrb[7].mxu0  ;;  %v254_v37 = vpop.f32.mrb[7].mxu1 }
 0x126   :  { %v425_v38 = vpack.c.bf16 %v222_v36, %v219_v30  ;;  %v445_v39 = vpack.c.bf16 %v254_v37, %v251_v31 }
 0x127   :  { %454 = vst [vmem:[#allocation7 + $0x18] sm:$0xff] %v430_v34   ;;  %458 = vst [vmem:[#allocation7 + $0x38] sm:$0xff] %v450_v35  }
 0x128   :  { %453 = vst [vmem:[#allocation7 + $0x10] sm:$0xff] %v425_v38   ;;  %457 = vst [vmem:[#allocation7 + $0x30] sm:$0xff] %v445_v39  }
 0x129   :  { %599 = shalt.err (!%p596_p6)
}
 0x12a   :  { %s600_s10 = scalar_lea.hbm %s683_s2, 1024 }
 0x12b   :  { %p601_p7 = scmp.ne.s32.totalorder %s683_s2, %s600_s10  ;;  %p604_p8 = scmp.lt.u32.totalorder %s600_s10, %s683_s2 }
 0x12d   :  { %p606_p9 = pnand %p604_p8, %p601_p7 }
 0x12f   :  { %609 = shalt.err (!%p606_p9)
}
 0x130   :  { %357 = dma.vmem_to_hbm [thread:$0]  %s352_s6, 1024, %s683_s2, [#allocation4], %s617_s19, %s617_s19, %s618_s20  }
 0x131   :  { %614 = dma.done.wait [#allocation4], 1024  }
 0x132   :  { %615 = vsyncadd [#allocation4], 4294966272 }
 0x133   :  { %361 = vsyncpa [#allocation3], 1 }
 0x134   :  { %362 = vsyncpa [#allocation6], 1 }
 0x135   :  { %363 = vsyncpa [#allocation4], 1 }

</bundles_post_ra>
